<compile_context>
chip_gen: v7x
topology: tpu7x:2x2x1
jax: 0.10.0
libtpu: 0.0.40
codegen_flags: <defaults>
</compile_context>

<pallas_src>
import jax
import jax.numpy as jnp
from jax.experimental import pallas as pl
from jax.experimental.pallas import tpu as pltpu

LN_EPS = 1e-5


def _round_up(x, m):
    return ((x + m - 1) // m) * m


def _layernorm(x, gamma, beta):
    mu = jnp.mean(x, axis=-1, keepdims=True)
    xc = x - mu                                       # compute once, reuse
    var = jnp.mean(xc * xc, axis=-1, keepdims=True)
    return xc * jax.lax.rsqrt(var + LN_EPS) * gamma + beta


def critic_kernel(state_ref, action_ref,
                  w1_ref, b1_ref, g1_ref, be1_ref,
                  w2_ref, b2_ref, g2_ref, be2_ref,
                  wa_ref, ba_ref,
                  wq_ref, bq_ref,
                  out_ref):
    wdt = w1_ref.dtype                                # f32 or bf16 matmul weights
    state = state_ref[...].astype(wdt)
    action = action_ref[...].astype(wdt)

    # fc1 -> LayerNorm -> ReLU   (accumulate in f32, vector math in f32)
    h1 = jnp.dot(state, w1_ref[...], preferred_element_type=jnp.float32) + b1_ref[...]
    h1 = jnp.maximum(_layernorm(h1, g1_ref[...], be1_ref[...]), 0.0)

    # fc2 -> LayerNorm
    h2 = jnp.dot(h1.astype(wdt), w2_ref[...], preferred_element_type=jnp.float32) + b2_ref[...]
    h2 = _layernorm(h2, g2_ref[...], be2_ref[...])

    # action branch: Linear -> ReLU
    av = jnp.dot(action, wa_ref[...], preferred_element_type=jnp.float32) + ba_ref[...]
    av = jnp.maximum(av, 0.0)

    # combine, ReLU, final q head as VPU multiply + lane-sum (wq is a [1, fc2] row)
    sa = jnp.maximum(h2 + av, 0.0)
    q = jnp.sum(sa * wq_ref[...].astype(jnp.float32), axis=-1, keepdims=True) + bq_ref[...]
    out_ref[...] = q.astype(out_ref.dtype)


def critic_forward(state, action, params, *, b_tile=128):
    """state: [B, input_dims], action: [B, n_actions] -> q: [B, 1] (f32)."""
    B, in_dims = state.shape
    n_act = action.shape[1]

    # Batch tile: multiple of 8 sublanes; pad the batch so it divides evenly.
    b_tile = _round_up(min(b_tile, B), 8)
    Bp = _round_up(B, b_tile)
    if Bp != B:
        state = jnp.pad(state, ((0, Bp - B), (0, 0)))
        action = jnp.pad(action, ((0, Bp - B), (0, 0)))

    weights = (params["w1"], params["b1"], params["g1"], params["be1"],
               params["w2"], params["b2"], params["g2"], params["be2"],
               params["wa"], params["ba"], params["wq"], params["bq"])

    def batch_spec(f):
        return pl.BlockSpec((b_tile, f), lambda i: (i, 0))

    def const_spec(p):
        # Constant index map: weight stays resident in VMEM across the grid.
        return pl.BlockSpec(p.shape, lambda i: (0, 0))

    in_specs = [batch_spec(in_dims), batch_spec(n_act)] + [const_spec(p) for p in weights]
    out_spec = pl.BlockSpec((b_tile, 1), lambda i: (i, 0))

    q = pl.pallas_call(
        critic_kernel,
        out_shape=jax.ShapeDtypeStruct((Bp, 1), jnp.float32),
        grid=(Bp // b_tile,),
        in_specs=in_specs,
        out_specs=out_spec,
        compiler_params=pltpu.CompilerParams(
            dimension_semantics=("parallel",)),   # megacore sharding on v7x
    )(state, action, *weights)
    return q[:B]


def init_params(key, input_dims, fc1_dims, fc2_dims, n_actions):
    """Synthetic init mirroring the given PyTorch __init__ (U(0, f) for fc1/fc2/q,
    default Linear init for action_value, LayerNorm gamma=1 / beta=0)."""
    ks = jax.random.split(key, 8)
    f1 = 1.0 / jnp.sqrt(jnp.float32(fc1_dims))   # fc1.weight.size()[0] == fc1_dims
    f2 = 1.0 / jnp.sqrt(jnp.float32(fc2_dims))   # fc2.weight.size()[0] == fc2_dims
    f3 = 0.003
    fa = 1.0 / jnp.sqrt(jnp.float32(n_actions))  # default Linear bound

    return {
        # fc1 : U(0, f1) weight & bias   (weights stored pre-transposed [in, out])
        "w1": jax.random.uniform(ks[0], (input_dims, fc1_dims), jnp.float32, 0.0, f1),
        "b1": jax.random.uniform(ks[1], (1, fc1_dims), jnp.float32, 0.0, f1),
        # bn1 (LayerNorm)
        "g1": jnp.ones((1, fc1_dims), jnp.float32),
        "be1": jnp.zeros((1, fc1_dims), jnp.float32),
        # fc2 : U(0, f2)
        "w2": jax.random.uniform(ks[2], (fc1_dims, fc2_dims), jnp.float32, 0.0, f2),
        "b2": jax.random.uniform(ks[3], (1, fc2_dims), jnp.float32, 0.0, f2),
        # bn2 (LayerNorm)
        "g2": jnp.ones((1, fc2_dims), jnp.float32),
        "be2": jnp.zeros((1, fc2_dims), jnp.float32),
        # action_value : default PyTorch Linear init U(-fa, fa)
        "wa": jax.random.uniform(ks[4], (n_actions, fc2_dims), jnp.float32, -fa, fa),
        "ba": jax.random.uniform(ks[5], (1, fc2_dims), jnp.float32, -fa, fa),
        # q head : U(0, 0.003); stored as a [1, fc2] row (same layout as q.weight)
        "wq": jax.random.uniform(ks[6], (1, fc2_dims), jnp.float32, 0.0, f3),
        "bq": jax.random.uniform(ks[7], (1, 1), jnp.float32, 0.0, f3),
    }


def reference_forward(state, action, p):
    """Pure-JAX reference with identical math (incl. optional bf16 matmul weights)."""
    wdt = p["w1"].dtype
    h1 = jnp.dot(state.astype(wdt), p["w1"], preferred_element_type=jnp.float32) + p["b1"]
    h1 = jnp.maximum(_layernorm(h1, p["g1"], p["be1"]), 0.0)
    h2 = jnp.dot(h1.astype(wdt), p["w2"], preferred_element_type=jnp.float32) + p["b2"]
    h2 = _layernorm(h2, p["g2"], p["be2"])
    av = jnp.maximum(
        jnp.dot(action.astype(wdt), p["wa"], preferred_element_type=jnp.float32) + p["ba"], 0.0)
    sa = jnp.maximum(h2 + av, 0.0)
    return jnp.sum(sa * p["wq"].astype(jnp.float32), axis=-1, keepdims=True) + p["bq"]


if __name__ == "__main__":
    B, INPUT_DIMS, FC1, FC2, N_ACTIONS = 16, 16, 32, 32, 4
    B_TILE = 8   # 2 grid steps -> exercises the batch pipeline / parallel axis

    key = jax.random.PRNGKey(0)
    k_state, k_action, k_params = jax.random.split(key, 3)

    state = jax.random.normal(k_state, (B, INPUT_DIMS), jnp.float32)
    action = jax.random.normal(k_action, (B, N_ACTIONS), jnp.float32)
    params = init_params(k_params, INPUT_DIMS, FC1, FC2, N_ACTIONS)

    # --- f32 path: bit-faithful to the PyTorch module ---
    q = jax.block_until_ready(critic_forward(state, action, params, b_tile=B_TILE))
    q_ref = reference_forward(state, action, params)
    assert q.shape == (B, 1)
    assert jnp.allclose(q, q_ref, atol=1e-5, rtol=1e-5), (q, q_ref)

    # --- bf16 matmul weights (MXU-native on v6e/v7x), f32 accumulation & LN ---
    params_bf16 = dict(params,
                       w1=params["w1"].astype(jnp.bfloat16),
                       w2=params["w2"].astype(jnp.bfloat16),
                       wa=params["wa"].astype(jnp.bfloat16))
    q16 = jax.block_until_ready(critic_forward(state, action, params_bf16, b_tile=B_TILE))
    q16_ref = reference_forward(state, action, params_bf16)
    assert jnp.allclose(q16, q16_ref, atol=5e-2, rtol=5e-2), (q16, q16_ref)

    print("KERNEL_OK")
</pallas_src>

<mosaic_0001>
module attributes {stable_mosaic.version = 11 : i64} {
  func.func @critic_kernel(%arg0: i32, %arg1: memref<8x16xf32, #tpu.memory_space<vmem>>, %arg2: memref<8x4xf32, #tpu.memory_space<vmem>>, %arg3: memref<16x32xf32, #tpu.memory_space<vmem>>, %arg4: memref<1x32xf32, #tpu.memory_space<vmem>>, %arg5: memref<1x32xf32, #tpu.memory_space<vmem>>, %arg6: memref<1x32xf32, #tpu.memory_space<vmem>>, %arg7: memref<32x32xf32, #tpu.memory_space<vmem>>, %arg8: memref<1x32xf32, #tpu.memory_space<vmem>>, %arg9: memref<1x32xf32, #tpu.memory_space<vmem>>, %arg10: memref<1x32xf32, #tpu.memory_space<vmem>>, %arg11: memref<4x32xf32, #tpu.memory_space<vmem>>, %arg12: memref<1x32xf32, #tpu.memory_space<vmem>>, %arg13: memref<1x32xf32, #tpu.memory_space<vmem>>, %arg14: memref<1x1xf32, #tpu.memory_space<vmem>>, %arg15: memref<8x1xf32, #tpu.memory_space<vmem>>) attributes {dimension_semantics = [#tpu.dimension_semantics<parallel>], iteration_bounds = array<i64: 2>, scalar_prefetch = 0 : i64, scratch_operands = 0 : i64, tpu.core_type = #tpu.core_type<tc>, window_params = [{transform_indices = @transform_0, window_bounds = array<i64: 8, 16>}, {transform_indices = @transform_1, window_bounds = array<i64: 8, 4>}, {pipeline_mode = #tpu.pipeline_mode<synchronous>, transform_indices = @transform_2, window_bounds = array<i64: 16, 32>}, {pipeline_mode = #tpu.pipeline_mode<synchronous>, transform_indices = @transform_3, window_bounds = array<i64: 1, 32>}, {pipeline_mode = #tpu.pipeline_mode<synchronous>, transform_indices = @transform_4, window_bounds = array<i64: 1, 32>}, {pipeline_mode = #tpu.pipeline_mode<synchronous>, transform_indices = @transform_5, window_bounds = array<i64: 1, 32>}, {pipeline_mode = #tpu.pipeline_mode<synchronous>, transform_indices = @transform_6, window_bounds = array<i64: 32, 32>}, {pipeline_mode = #tpu.pipeline_mode<synchronous>, transform_indices = @transform_7, window_bounds = array<i64: 1, 32>}, {pipeline_mode = #tpu.pipeline_mode<synchronous>, transform_indices = @transform_8, window_bounds = array<i64: 1, 32>}, {pipeline_mode = #tpu.pipeline_mode<synchronous>, transform_indices = @transform_9, window_bounds = array<i64: 1, 32>}, {pipeline_mode = #tpu.pipeline_mode<synchronous>, transform_indices = @transform_10, window_bounds = array<i64: 4, 32>}, {pipeline_mode = #tpu.pipeline_mode<synchronous>, transform_indices = @transform_11, window_bounds = array<i64: 1, 32>}, {pipeline_mode = #tpu.pipeline_mode<synchronous>, transform_indices = @transform_12, window_bounds = array<i64: 1, 32>}, {pipeline_mode = #tpu.pipeline_mode<synchronous>, transform_indices = @transform_13, window_bounds = array<i64: 1, 1>}, {transform_indices = @transform_14, window_bounds = array<i64: 8, 1>}]} {
    %c0 = arith.constant 0 : index
    %c0_0 = arith.constant 0 : index
    %0 = vector.load %arg1[%c0, %c0_0] : memref<8x16xf32, #tpu.memory_space<vmem>>, vector<8x16xf32>
    %c0_1 = arith.constant 0 : index
    %c0_2 = arith.constant 0 : index
    %1 = vector.load %arg2[%c0_1, %c0_2] : memref<8x4xf32, #tpu.memory_space<vmem>>, vector<8x4xf32>
    %c0_3 = arith.constant 0 : index
    %c0_4 = arith.constant 0 : index
    %2 = vector.load %arg3[%c0_3, %c0_4] : memref<16x32xf32, #tpu.memory_space<vmem>>, vector<16x32xf32>
    %cst = arith.constant dense<0.000000e+00> : vector<8x32xf32>
    %3 = tpu.matmul %0, %2, %cst {dimension_numbers = #tpu.dot_dimension_numbers<[1], [0], [0], [1], [0, 0, 1, 1], [], []>} : vector<8x16xf32>, vector<16x32xf32>, vector<8x32xf32> -> vector<8x32xf32>
    %c0_5 = arith.constant 0 : index
    %c0_6 = arith.constant 0 : index
    %4 = vector.load %arg4[%c0_5, %c0_6] : memref<1x32xf32, #tpu.memory_space<vmem>>, vector<1x32xf32>
    %5 = vector.broadcast %4 : vector<1x32xf32> to vector<8x32xf32>
    %6 = arith.addf %3, %5 : vector<8x32xf32>
    %c0_7 = arith.constant 0 : index
    %c0_8 = arith.constant 0 : index
    %7 = vector.load %arg5[%c0_7, %c0_8] : memref<1x32xf32, #tpu.memory_space<vmem>>, vector<1x32xf32>
    %c0_9 = arith.constant 0 : index
    %c0_10 = arith.constant 0 : index
    %8 = vector.load %arg6[%c0_9, %c0_10] : memref<1x32xf32, #tpu.memory_space<vmem>>, vector<1x32xf32>
    %cst_11 = arith.constant dense<0.000000e+00> : vector<8xf32>
    %9 = vector.multi_reduction <add>, %6, %cst_11 [1] : vector<8x32xf32> to vector<8xf32>
    %10 = vector.shape_cast %9 : vector<8xf32> to vector<8x1xf32>
    %cst_12 = arith.constant 3.200000e+01 : f32
    %11 = vector.broadcast %cst_12 : f32 to vector<8x1xf32>
    %12 = arith.divf %10, %11 : vector<8x1xf32>
    %13 = vector.broadcast %12 : vector<8x1xf32> to vector<8x32xf32>
    %14 = arith.subf %6, %13 : vector<8x32xf32>
    %15 = arith.mulf %14, %14 : vector<8x32xf32>
    %cst_13 = arith.constant dense<0.000000e+00> : vector<8xf32>
    %16 = vector.multi_reduction <add>, %15, %cst_13 [1] : vector<8x32xf32> to vector<8xf32>
    %17 = vector.shape_cast %16 : vector<8xf32> to vector<8x1xf32>
    %cst_14 = arith.constant 3.200000e+01 : f32
    %18 = vector.broadcast %cst_14 : f32 to vector<8x1xf32>
    %19 = arith.divf %17, %18 : vector<8x1xf32>
    %cst_15 = arith.constant 9.99999974E-6 : f32
    %20 = vector.broadcast %cst_15 : f32 to vector<8x1xf32>
    %21 = arith.addf %19, %20 : vector<8x1xf32>
    %22 = math.rsqrt %21 : vector<8x1xf32>
    %23 = vector.broadcast %22 : vector<8x1xf32> to vector<8x32xf32>
    %24 = arith.mulf %14, %23 : vector<8x32xf32>
    %25 = vector.broadcast %7 : vector<1x32xf32> to vector<8x32xf32>
    %26 = arith.mulf %24, %25 : vector<8x32xf32>
    %27 = vector.broadcast %8 : vector<1x32xf32> to vector<8x32xf32>
    %28 = arith.addf %26, %27 : vector<8x32xf32>
    %cst_16 = arith.constant 0.000000e+00 : f32
    %29 = vector.broadcast %cst_16 : f32 to vector<8x32xf32>
    %30 = arith.maximumf %28, %29 : vector<8x32xf32>
    %c0_17 = arith.constant 0 : index
    %c0_18 = arith.constant 0 : index
    %31 = vector.load %arg7[%c0_17, %c0_18] : memref<32x32xf32, #tpu.memory_space<vmem>>, vector<32x32xf32>
    %cst_19 = arith.constant dense<0.000000e+00> : vector<8x32xf32>
    %32 = tpu.matmul %30, %31, %cst_19 {dimension_numbers = #tpu.dot_dimension_numbers<[1], [0], [0], [1], [0, 0, 1, 1], [], []>} : vector<8x32xf32>, vector<32x32xf32>, vector<8x32xf32> -> vector<8x32xf32>
    %c0_20 = arith.constant 0 : index
    %c0_21 = arith.constant 0 : index
    %33 = vector.load %arg8[%c0_20, %c0_21] : memref<1x32xf32, #tpu.memory_space<vmem>>, vector<1x32xf32>
    %34 = vector.broadcast %33 : vector<1x32xf32> to vector<8x32xf32>
    %35 = arith.addf %32, %34 : vector<8x32xf32>
    %c0_22 = arith.constant 0 : index
    %c0_23 = arith.constant 0 : index
    %36 = vector.load %arg9[%c0_22, %c0_23] : memref<1x32xf32, #tpu.memory_space<vmem>>, vector<1x32xf32>
    %c0_24 = arith.constant 0 : index
    %c0_25 = arith.constant 0 : index
    %37 = vector.load %arg10[%c0_24, %c0_25] : memref<1x32xf32, #tpu.memory_space<vmem>>, vector<1x32xf32>
    %cst_26 = arith.constant dense<0.000000e+00> : vector<8xf32>
    %38 = vector.multi_reduction <add>, %35, %cst_26 [1] : vector<8x32xf32> to vector<8xf32>
    %39 = vector.shape_cast %38 : vector<8xf32> to vector<8x1xf32>
    %cst_27 = arith.constant 3.200000e+01 : f32
    %40 = vector.broadcast %cst_27 : f32 to vector<8x1xf32>
    %41 = arith.divf %39, %40 : vector<8x1xf32>
    %42 = vector.broadcast %41 : vector<8x1xf32> to vector<8x32xf32>
    %43 = arith.subf %35, %42 : vector<8x32xf32>
    %44 = arith.mulf %43, %43 : vector<8x32xf32>
    %cst_28 = arith.constant dense<0.000000e+00> : vector<8xf32>
    %45 = vector.multi_reduction <add>, %44, %cst_28 [1] : vector<8x32xf32> to vector<8xf32>
    %46 = vector.shape_cast %45 : vector<8xf32> to vector<8x1xf32>
    %cst_29 = arith.constant 3.200000e+01 : f32
    %47 = vector.broadcast %cst_29 : f32 to vector<8x1xf32>
    %48 = arith.divf %46, %47 : vector<8x1xf32>
    %cst_30 = arith.constant 9.99999974E-6 : f32
    %49 = vector.broadcast %cst_30 : f32 to vector<8x1xf32>
    %50 = arith.addf %48, %49 : vector<8x1xf32>
    %51 = math.rsqrt %50 : vector<8x1xf32>
    %52 = vector.broadcast %51 : vector<8x1xf32> to vector<8x32xf32>
    %53 = arith.mulf %43, %52 : vector<8x32xf32>
    %54 = vector.broadcast %36 : vector<1x32xf32> to vector<8x32xf32>
    %55 = arith.mulf %53, %54 : vector<8x32xf32>
    %56 = vector.broadcast %37 : vector<1x32xf32> to vector<8x32xf32>
    %57 = arith.addf %55, %56 : vector<8x32xf32>
    %c0_31 = arith.constant 0 : index
    %c0_32 = arith.constant 0 : index
    %58 = vector.load %arg11[%c0_31, %c0_32] : memref<4x32xf32, #tpu.memory_space<vmem>>, vector<4x32xf32>
    %cst_33 = arith.constant dense<0.000000e+00> : vector<8x32xf32>
    %59 = tpu.matmul %1, %58, %cst_33 {dimension_numbers = #tpu.dot_dimension_numbers<[1], [0], [0], [1], [0, 0, 1, 1], [], []>} : vector<8x4xf32>, vector<4x32xf32>, vector<8x32xf32> -> vector<8x32xf32>
    %c0_34 = arith.constant 0 : index
    %c0_35 = arith.constant 0 : index
    %60 = vector.load %arg12[%c0_34, %c0_35] : memref<1x32xf32, #tpu.memory_space<vmem>>, vector<1x32xf32>
    %61 = vector.broadcast %60 : vector<1x32xf32> to vector<8x32xf32>
    %62 = arith.addf %59, %61 : vector<8x32xf32>
    %cst_36 = arith.constant 0.000000e+00 : f32
    %63 = vector.broadcast %cst_36 : f32 to vector<8x32xf32>
    %64 = arith.maximumf %62, %63 : vector<8x32xf32>
    %65 = arith.addf %57, %64 : vector<8x32xf32>
    %cst_37 = arith.constant 0.000000e+00 : f32
    %66 = vector.broadcast %cst_37 : f32 to vector<8x32xf32>
    %67 = arith.maximumf %65, %66 : vector<8x32xf32>
    %c0_38 = arith.constant 0 : index
    %c0_39 = arith.constant 0 : index
    %68 = vector.load %arg13[%c0_38, %c0_39] : memref<1x32xf32, #tpu.memory_space<vmem>>, vector<1x32xf32>
    %69 = vector.broadcast %68 : vector<1x32xf32> to vector<8x32xf32>
    %70 = arith.mulf %67, %69 : vector<8x32xf32>
    %cst_40 = arith.constant dense<0.000000e+00> : vector<8xf32>
    %71 = vector.multi_reduction <add>, %70, %cst_40 [1] : vector<8x32xf32> to vector<8xf32>
    %72 = vector.shape_cast %71 : vector<8xf32> to vector<8x1xf32>
    %c0_41 = arith.constant 0 : index
    %c0_42 = arith.constant 0 : index
    %73 = vector.load %arg14[%c0_41, %c0_42] : memref<1x1xf32, #tpu.memory_space<vmem>>, vector<1x1xf32>
    %74 = vector.broadcast %73 : vector<1x1xf32> to vector<8x1xf32>
    %75 = arith.addf %72, %74 : vector<8x1xf32>
    %c0_43 = arith.constant 0 : index
    %c0_44 = arith.constant 0 : index
    %76 = vector.load %arg15[%c0_43, %c0_44] : memref<8x1xf32, #tpu.memory_space<vmem>>, vector<8x1xf32>
    tpu.vector_store %arg15[%c0_43, %c0_44], %75 {strides = array<i32>} : memref<8x1xf32, #tpu.memory_space<vmem>>, vector<8x1xf32>,
    return
  }
  func.func @transform_0(%arg0: i32) -> (i32, i32) {
    %c0_i32 = arith.constant 0 : i32
    %c0_i32_0 = arith.constant 0 : i32
    return %arg0, %c0_i32 : i32, i32
  }
  func.func @transform_1(%arg0: i32) -> (i32, i32) {
    %c0_i32 = arith.constant 0 : i32
    %c0_i32_0 = arith.constant 0 : i32
    return %arg0, %c0_i32 : i32, i32
  }
  func.func @transform_2(%arg0: i32) -> (i32, i32) {
    %c0_i32 = arith.constant 0 : i32
    %c0_i32_0 = arith.constant 0 : i32
    %c0_i32_1 = arith.constant 0 : i32
    return %c0_i32, %c0_i32_0 : i32, i32
  }
  func.func @transform_3(%arg0: i32) -> (i32, i32) {
    %c0_i32 = arith.constant 0 : i32
    %c0_i32_0 = arith.constant 0 : i32
    %c0_i32_1 = arith.constant 0 : i32
    return %c0_i32, %c0_i32_0 : i32, i32
  }
  func.func @transform_4(%arg0: i32) -> (i32, i32) {
    %c0_i32 = arith.constant 0 : i32
    %c0_i32_0 = arith.constant 0 : i32
    %c0_i32_1 = arith.constant 0 : i32
    return %c0_i32, %c0_i32_0 : i32, i32
  }
  func.func @transform_5(%arg0: i32) -> (i32, i32) {
    %c0_i32 = arith.constant 0 : i32
    %c0_i32_0 = arith.constant 0 : i32
    %c0_i32_1 = arith.constant 0 : i32
    return %c0_i32, %c0_i32_0 : i32, i32
  }
  func.func @transform_6(%arg0: i32) -> (i32, i32) {
    %c0_i32 = arith.constant 0 : i32
    %c0_i32_0 = arith.constant 0 : i32
    %c0_i32_1 = arith.constant 0 : i32
    return %c0_i32, %c0_i32_0 : i32, i32
  }
  func.func @transform_7(%arg0: i32) -> (i32, i32) {
    %c0_i32 = arith.constant 0 : i32
    %c0_i32_0 = arith.constant 0 : i32
    %c0_i32_1 = arith.constant 0 : i32
    return %c0_i32, %c0_i32_0 : i32, i32
  }
  func.func @transform_8(%arg0: i32) -> (i32, i32) {
    %c0_i32 = arith.constant 0 : i32
    %c0_i32_0 = arith.constant 0 : i32
    %c0_i32_1 = arith.constant 0 : i32
    return %c0_i32, %c0_i32_0 : i32, i32
  }
  func.func @transform_9(%arg0: i32) -> (i32, i32) {
    %c0_i32 = arith.constant 0 : i32
    %c0_i32_0 = arith.constant 0 : i32
    %c0_i32_1 = arith.constant 0 : i32
    return %c0_i32, %c0_i32_0 : i32, i32
  }
  func.func @transform_10(%arg0: i32) -> (i32, i32) {
    %c0_i32 = arith.constant 0 : i32
    %c0_i32_0 = arith.constant 0 : i32
    %c0_i32_1 = arith.constant 0 : i32
    return %c0_i32, %c0_i32_0 : i32, i32
  }
  func.func @transform_11(%arg0: i32) -> (i32, i32) {
    %c0_i32 = arith.constant 0 : i32
    %c0_i32_0 = arith.constant 0 : i32
    %c0_i32_1 = arith.constant 0 : i32
    return %c0_i32, %c0_i32_0 : i32, i32
  }
  func.func @transform_12(%arg0: i32) -> (i32, i32) {
    %c0_i32 = arith.constant 0 : i32
    %c0_i32_0 = arith.constant 0 : i32
    %c0_i32_1 = arith.constant 0 : i32
    return %c0_i32, %c0_i32_0 : i32, i32
  }
  func.func @transform_13(%arg0: i32) -> (i32, i32) {
    %c0_i32 = arith.constant 0 : i32
    %c0_i32_0 = arith.constant 0 : i32
    %c0_i32_1 = arith.constant 0 : i32
    return %c0_i32, %c0_i32_0 : i32, i32
  }
  func.func @transform_14(%arg0: i32) -> (i32, i32) {
    %c0_i32 = arith.constant 0 : i32
    %c0_i32_0 = arith.constant 0 : i32
    return %arg0, %c0_i32 : i32, i32
  }
}

</mosaic_0001>

<bundles_post_ra>
// kernel: tpu_custom_call.1
= control target key start
LH: loop header
LB: loop body
LE: loop exit
PB: predicated region body
PF: predicated region fallthrough
CT: control target
= control target key end

     0   :  { %s1448_s0 = inlined_call_operand.hbm [shape: f32[16,16], index: 0, kind: input, shape index: {}]   ;;  %s1449_s1 = inlined_call_operand.vmem [shape: f32[16,4], index: 1, kind: input, shape index: {}]   ;;  %s1450_s2 = inlined_call_operand.hbm [shape: f32[16,32], index: 2, kind: input, shape index: {}]   ;;  %s1451_s3 = inlined_call_operand.vmem [shape: f32[1,32], index: 3, kind: input, shape index: {}]   ;;  %s1452_s4 = inlined_call_operand.vmem [shape: f32[1,32], index: 4, kind: input, shape index: {}]   ;;  %s1453_s5 = inlined_call_operand.vmem [shape: f32[1,32], index: 5, kind: input, shape index: {}]   ;;  %s1454_s6 = inlined_call_operand.vmem [shape: f32[32,32], index: 6, kind: input, shape index: {}]   ;;  %s1455_s7 = inlined_call_operand.vmem [shape: f32[1,32], index: 7, kind: input, shape index: {}]   ;;  %s1456_s8 = inlined_call_operand.vmem [shape: f32[1,32], index: 8, kind: input, shape index: {}]   ;;  %s1457_s9 = inlined_call_operand.vmem [shape: f32[1,32], index: 9, kind: input, shape index: {}]   ;;  %s1458_s10 = inlined_call_operand.vmem [shape: f32[4,32], index: 10, kind: input, shape index: {}]   ;;  %s1459_s11 = inlined_call_operand.vmem [shape: f32[1,32], index: 11, kind: input, shape index: {}]   ;;  %s1460_s12 = inlined_call_operand.vmem [shape: f32[1,32], index: 12, kind: input, shape index: {}]   ;;  %s1461_s13 = inlined_call_operand.<no memory space> [shape: f32[1,1], index: 13, kind: input, shape index: {}]   ;;  %s1462_s14 = inlined_call_operand.vmem [shape: f32[16,1], index: 14, kind: output, shape index: {}]  }
   0x1   :  { %1468 = sst [smem:[#allocation10_spill]] %s1456_s8  ;;  %v19_v0 = vstv %s1461_s13 }
   0x2   :  { %1469 = sst [smem:[#allocation11_spill]] %s1457_s9  ;;  %20 = vst [vmem:[#allocation2] sm:$0x1] %v19_v0 }
   0x3   :  { %1470 = sst [smem:[#allocation12_spill]] %s1460_s12 }
   0x4   :  { %1471 = sst [smem:[#allocation13_spill]] %s1462_s14 }
   0x5   :  { %21 = vsyncpa [#allocation4], 0 }
   0x6   :  { %23 = vsyncpa [#allocation4 + $0x1], 0 }
   0x7   :  { %24 = vsyncpa [#allocation6], 0  ;;  %s1254_s15 = smov 0   ;;  %s1256_s16 = smov 0  }
   0x8   :  { %s1258_s17 = smov 0   ;;  %s1260_s18 = smov 0  }
   0x9 LB: > { %s1273_s13 = sadd.s32 4294967295, %s1167_s18   ;;  %p50_p0 = scmp.ne.s32.totalorder %s1159_s16, %s1155_s15  ;;  %s1167_s18 = sphi %s1260_s18, %s1485_s18   ;;  %s1163_s17 = sphi %s1258_s17, %s1488_s17   ;;  %s1159_s16 = sphi %s1256_s16, %s1487_s16   ;;  %s1155_s15 = sphi %s1254_s15, %s1486_s15  }
   0xa   : > { %p1463_p1 = scmp.eq.s32.totalorder %s1273_s13, 0  ;;  %p945_p2 = scmp.ge.s32.totalorder %s1167_s18, 1 }
   0xb   : > { %p365_p3 = scmp.lt.s32.totalorder %s1167_s18, 3  ;;  %s1169_s21 = smov [#allocation5]  }
   0xc   : > { %p1281_p4 = por %p1463_p1, %p50_p0  ;;  %s377_s22 = sshll.u32 %s1169_s21, 4  ;;  %s378_s22 = int_to_ptr.vmem [resolvable:$true] %s377_s22 }
   0xd   : > { %p1285_p5 = pnand %p945_p2, %p365_p3  ;;  %s1298_s24 = sadd.s32 1, %s1167_s18  }
   0xe   : > { %s1472_s19 = scalar_select %p1281_p4, 1, 0 }
   0xf   : > { %s1473_s20 = scalar_select %p1285_p5, 1, 0 }
  0x10   : > { %p1018_p6 = pneg %p1285_p5  ;;  %1475 = sst [smem:[#allocation9_spill]] %s1298_s24 }
  0x11   : > { %s37_s25 = sadd.s32 1, %s1163_s17  ;;  %s34_s26 = ssub.s32 %s1167_s18, %s1298_s24 }
  0x12   : > { %p1293_p7 = pnand %p1018_p6, %p1463_p1  ;;  %s1071_s29 = scalar_lea.hbm %s1450_s2, 256 }
  0x13   : > { %p1072_p8 = scmp.ne.s32.totalorder %s1450_s2, %s1071_s29  ;;  %p1078_p12 = scmp.lt.u32.totalorder %s1071_s29, %s1450_s2 }
  0x14   : > { %p1073_p9 = pneg %p1293_p7 }
  0x16   : > { %p1074_p10 = pnand %p1073_p9, %p1072_p8 }
  0x18   : > { %p1075_p11 = pneg %p1074_p10 }
  0x1a   : > { %p1080_p13 = pnand %p1078_p12, %p1075_p11 }
  0x1c   : > { %1083 = shalt.err (!%p1080_p13)
}
  0x1d   : > { %s1084_s12 = scalar_lea.vmem %s378_s22, 256  ;;  %p1092_p6 = scmp.lt.s32.totalorder %s378_s22, %s378_s22 }
  0x1e   : > { %p1085_p0 = scmp.ne.s32.totalorder %s378_s22, %s1084_s12  ;;  %p1093_p1 = scmp.lt.s32.totalorder %s1084_s12, %s1084_s12 }
  0x20   : > { %p1087_p2 = pnand %p1085_p0, %p1073_p9  ;;  %p1094_p4 = por %p1093_p1, %p1092_p6 }
  0x22   : > { %p1088_p3 = pneg %p1087_p2 }
  0x24   : > { %p1095_p5 = pnand %p1094_p4, %p1088_p3 }
  0x26   : > { %1098 = shalt.err (!%p1095_p5)
}
  0x27   : > { %s1170_s27 = smov 128   ;;  %s1171_s14 = smov 8  }
  0x28   : > { %1021 = dma.hbm_to_vmem [thread:$0]  (!%p1293_p7), %s1450_s2, 256, %s378_s22, [#allocation6], %s1170_s27, %s1170_s27, %s1171_s14  }
  0x29   : > { %p35_p8 = scmp.eq.s32.totalorder %s34_s26, 0  ;;  %p44_p9 = scmp.ne.s32.totalorder %s1163_s17, %s1159_s16 }
  0x2a   : > { %p45_p1 = scmp.eq.s32.totalorder %s1167_s18, 0  ;;  %p1027_p4 = scmp.lt.s32.totalorder %s1167_s18, 2 }
  0x2b   : > { %s1324_s12 = scalar_select %p35_p8, %s1163_s17, %s37_s25  }
  0x2c   : > { %p46_p5 = por %p45_p1, %p44_p9  ;;  %s424_s30 = sand.u32 1, %s1163_s17  }
  0x2d   : > { %s948_s15 = sshll.u32 %s424_s30, 3  ;;  %s949_s21 = sshll.u32 %s1167_s18, 7 }
  0x2e   : > { %s1331_s8 = scalar_lea.hbm %s1448_s0, %s949_s21  ;;  %s428_s22 = scalar_lea.vmem [#allocation3], %s948_s15 }
  0x2f   : > { %s435_s23 = sshll.u32 %s428_s22, 4  ;;  %p1335_p7 = pnand %p1027_p4, %p46_p5  ;;  %s1333_s23 = int_to_ptr.vmem [resolvable:$true] %s435_s23 }
  0x30   : > { %s425_s18 = scalar_lea.sflag [#allocation4], %s424_s30  ;;  %s1099_s26 = scalar_lea.hbm %s1331_s8, 128 }
  0x31   : > { %p1100_p10 = scmp.ne.s32.totalorder %s1331_s8, %s1099_s26  ;;  %p1101_p11 = pneg %p1335_p7 }
  0x32   : > { %s1104_s27 = scalar_lea.hbm %s1448_s0, 256  ;;  %p1105_p0 = scmp.lt.u32.totalorder %s1331_s8, %s1448_s0 }
  0x33   : > { %p1102_p12 = pnand %p1101_p11, %p1100_p10  ;;  %p1106_p2 = scmp.lt.u32.totalorder %s1104_s27, %s1099_s26 }
  0x34   : > { %p1108_p6 = scmp.lt.u32.totalorder %s1099_s26, %s1331_s8 }
  0x35   : > { %p1103_p13 = pneg %p1102_p12  ;;  %p1107_p3 = por %p1106_p2, %p1105_p0 }
  0x37   : > { %p1109_p8 = por %p1108_p6, %p1107_p3 }
  0x39   : > { %p1110_p9 = pnand %p1109_p8, %p1103_p13 }
  0x3b   : > { %1113 = shalt.err (!%p1110_p9)
}
  0x3c   : > { %s1114_s29 = scalar_lea.vmem %s1333_s23, 128  ;;  %s1172_s30 = smov [#allocation3]  }
  0x3d   : > { %p1115_p1 = scmp.ne.s32.totalorder %s1333_s23, %s1114_s29  ;;  %s1119_s15 = sshll.u32 %s1172_s30, 4  ;;  %s1120_s15 = int_to_ptr.vmem [resolvable:$false] %s1119_s15 }
  0x3e   : > { %s1121_s21 = scalar_lea.vmem %s1120_s15, 256  ;;  %p1122_p10 = scmp.lt.s32.totalorder %s1333_s23, %s1120_s15 }
  0x3f   : > { %p1117_p4 = pnand %p1115_p1, %p1101_p11  ;;  %p1123_p12 = scmp.lt.s32.totalorder %s1121_s21, %s1114_s29 }
  0x41   : > { %p1118_p5 = pneg %p1117_p4  ;;  %p1124_p0 = por %p1123_p12, %p1122_p10 }
  0x43   : > { %p1125_p2 = pnand %p1124_p0, %p1118_p5 }
  0x45   : > { %1128 = shalt.err (!%p1125_p2)
}
  0x46   : > { %1025 = dma.hbm_to_vmem [thread:$0]  (!%p1335_p7), %s1331_s8, 128, %s1333_s23, %s425_s18  }
  0x47   : > { %p1477_p13 = scmp.ne.s32.totalorder %s1473_s20, 0 }
  0x48   : > { %s453_s22 = sand.u32 (!%p1477_p13), 1, %s1159_s16   ;;  %p1478_p11 = scmp.ne.s32.totalorder (!%p1477_p13), %s1472_s19, 0 }
  0x49   : > { %451 = sbr.rel (%p1477_p13) target bundleno = 1298 (0x512), region = 76  ;;  %s951_s26 = sshll.u32 (!%p1477_p13), %s453_s22, 3 }
  0x4a   : > { %s454_s9 = scalar_lea.sflag (!%p1477_p13), [#allocation4], %s453_s22  ;;  %s457_s24 = scalar_lea.vmem (!%p1477_p13), [#allocation3], %s951_s26 }
  0x50   : > { %1146 = dma.done.wait (%p1478_p11), %s454_s9, 128  }
  0x51   : > { %1148 = vsyncadd (%p1478_p11), %s454_s9, 4294967168  ;;  %p1479_p3 = scmp.eq.s32.totalorder %s1273_s13, 0 }
  0x53   : > { %1150 = dma.done.wait (%p1479_p3), [#allocation6], 256   ;;  %p1480_p6 = pmov %p1479_p3 }
  0x54   : > { %v1173_v1 = vmov 0.0|0.0   ;;  %vm1174_vm0 = vmmov 0   ;;  %v1175_v2 = vmov 0.0   ;;  %v519_v3 = vld [vmem:[#allocation5] sm:$0xff]  ;;  %v520_v4 = vld [vmem:[#allocation5 + $0x8] sm:$0xff]  ;;  %v517_v6 = vld [vmem:[%s457_s24] sm:$0xff] }
  0x55   : > { %1152 = vsyncadd (%p1480_p6), [#allocation6], 4294967040  ;;  %1003 = vmatprep.subr.bf16.mxu0 %v1173_v1  ;;  %984 = vmatprep.mubr.msk.f32.mxu0 %vm1174_vm0, %v1175_v2  ;;  %v1004_v5 = vpack.c.bf16 %v520_v4, %v519_v3  ;;  %vm528_vm1 = vcmask 130048   ;;  %v955_v7 = vld [vmem:[%s1451_s3] ss:$0 sm:$0xff]  ;;  %vm604_vm2 = vcmask 261120  }
  0x56   : > { %1006 = vmatprep.subr.bf16.mxu1 %v1173_v1  ;;  %995 = vmatprep.mubr.msk.f32.mxu1 %vm1174_vm0, %v1175_v2  ;;  %v634_v17 = vld [vmem:[%s1454_s6] sm:$0xff]  ;;  %v635_v18 = vld [vmem:[%s1454_s6 + $0x8] sm:$0xff]  ;;  %v636_v19 = vld [vmem:[%s1454_s6 + $0x10] sm:$0xff]  ;;  %vm759_vm3 = vcmask 1043456   ;;  %p509_p7 = scmp.lt.s32.totalorder %s1273_s13, 1  ;;  %vm755_vm4 = vcmask 31744  }
  0x57   : > { %1005 = vmatpush3.bf16.msra.mxu0 %v1004_v5  ;;  %v1007_v20 = vpack.c.bf16 %v635_v18, %v634_v17  ;;  %v637_v21 = vld [vmem:[%s1454_s6 + $0x18] sm:$0xff]  ;;  %v957_v27 = vld [vmem:[%s1452_s4] ss:$0 sm:$0xff]  ;;  %s1481_s29 = sld [smem:[#allocation10_spill]]  ;;  %s1482_s21 = sld [smem:[#allocation11_spill]]  ;;  %vm855_vm5 = vcmask 7168  }
  0x58   : > { %998 = vmatprep.subr.mxu0 %v1175_v2  ;;  %v1010_v22 = vpack.c.bf16 %v637_v21, %v636_v19  ;;  %v958_v29 = vld [vmem:[%s1453_s5] ss:$0 sm:$0xff]  ;;  %s1490_s13 = smov (!%p509_p7, %s1273_s13), 1  ;;  %s1483_s9 = sld [smem:[#allocation12_spill]] }
  0x59   : > { %1008 = vmatpush3.bf16.msra.mxu1 %v1007_v20  ;;  %v747_v33 = vld [vmem:[%s1458_s10] sm:$0xf]  ;;  %s953_s24 = sshll.u32 %s1490_s13, 3 }
  0x5a   : > { %985 = vmatmul.mubr.msk.f32.vlgmr.msra.gmra.mrb[0].mxu0 %vm528_vm1, %v517_v6  ;;  %1009 = vmatprep.subr.bf16.mxu1 %v1173_v1  ;;  %s512_s20 = scalar_lea.vmem %s1449_s1, %s953_s24  ;;  %v959_v35 = vld [vmem:[%s1455_s7] ss:$0 sm:$0xff] }
  0x5b   : > { %1000 = vmatprep.mubr.msk.f32.mxu0 %vm1174_vm0, %v1175_v2  ;;  %999 = vmatpush3.msk.msra.mxu0 %vm759_vm3, %v747_v33  ;;  %v518_v34 = vld [vmem:[%s512_s20] sm:$0xff]  ;;  %s1484_s20 = sld [smem:[#allocation13_spill]] }
  0x5c   : > { %v963_v50 = vld [vmem:[%s1459_s11] ss:$0 sm:$0xff] }
  0x5d   : > { %1011 = vmatpush3.bf16.msra.mxu1 %v1010_v22  ;;  %v961_v53 = vld [vmem:[%s1481_s29] ss:$0 sm:$0xff] }
  0x5e   : > { %1001 = vmatmul.mubr.msk.f32.vlgmr.msra.gmra.mrb[2].mxu0 %vm755_vm4, %v518_v34  ;;  %v962_v55 = vld [vmem:[%s1482_s21] ss:$0 sm:$0xff] }
  0x5f   : > { %v966_v60 = vld [vmem:[%s1483_s9] ss:$0 sm:$0xff] }
  0x60   : > { %v967_v0 = vld [vmem:[#allocation2] ss:$0 sm:$0xff] }
  0x61   : > { %s516_s23 = scalar_lea.vmem %s1484_s20, %s953_s24 }
 0x12d   : > { %v598_v8 = vpop.f32.mrb[0].mxu0 }
 0x12e   : > { %v599_v9 = vadd.f32 %v955_v7, %v598_v8  ;;  %v986_v10 = vpop.f32.mrb[1].mxu0 }
 0x130   : > { %v605_v11 = vsel %vm604_vm2, %v599_v9, 0.0 }
 0x131   : > { %606 = vadd.xlane.f32.xlu0 %v605_v11  ;;  %v829_v45 = vpop.f32.mrb[2].mxu0 }
 0x132   : > { %v1002_v46 = vpop.f32.mrb[3].mxu0  ;;  %v830_v51 = vadd.f32 %v963_v50, %v829_v45 }
 0x134   : > { %v833_v57 = vmax.f32 %v830_v51, 0.0 }
 0x1be   : > { %v607_v12 = vpop.xlane.xlu0 %606 }
 0x1bf   : > { %v609_v13 = vmul.f32 0.03125, %v607_v12 }
 0x1c1   : > { %v610_v14 = vsub.f32 %v599_v9, %v609_v13 }
 0x1c3   : > { %v611_v15 = vmul.f32 %v610_v14, %v610_v14 }
 0x1c5   : > { %v612_v16 = vsel %vm604_vm2, %v611_v15, 0.0 }
 0x1c6   : > { %613 = vadd.xlane.f32.xlu0 %v612_v16 }
 0x253   : > { %v614_v23 = vpop.xlane.xlu0 %613 }
 0x254   : > { %v615_v24 = vmul.f32 0.03125, %v614_v23 }
 0x256   : > { %v616_v25 = vadd.f32 1e-05, %v615_v24 }
 0x258   : > { %1067 = vrsqrt.f32 %v616_v25 }
 0x262   : > { %v1068_v26 = vpop.eup %1067 }
 0x263   : > { %v618_v28 = vmul.f32 %v1068_v26, %v610_v14 }
 0x265   : > { %v625_v30 = vmul.f32 %v957_v27, %v618_v28 }
 0x267   : > { %v632_v31 = vadd.f32 %v958_v29, %v625_v30 }
 0x269   : > { %v633_v32 = vmax.f32 %v632_v31, 0.0 }
 0x26b   : > { %996 = vmatmul.mubr.msk.f32.vlgmr.msra.gmra.mrb[0].mxu1 %vm604_vm2, %v633_v32 }
 0x33e   : > { %v714_v36 = vpop.f32.mrb[0].mxu1 }
 0x33f   : > { %v715_v37 = vadd.f32 %v959_v35, %v714_v36  ;;  %v997_v38 = vpop.f32.mrb[1].mxu1 }
 0x341   : > { %v720_v39 = vsel %vm604_vm2, %v715_v37, 0.0 }
 0x342   : > { %721 = vadd.xlane.f32.xlu1 %v720_v39 }
 0x3cf   : > { %v722_v40 = vpop.xlane.xlu1 %721 }
 0x3d0   : > { %v723_v41 = vmul.f32 0.03125, %v722_v40 }
 0x3d2   : > { %v724_v42 = vsub.f32 %v715_v37, %v723_v41 }
 0x3d4   : > { %v725_v43 = vmul.f32 %v724_v42, %v724_v42 }
 0x3d6   : > { %v726_v44 = vsel %vm604_vm2, %v725_v43, 0.0 }
 0x3d7   : > { %727 = vadd.xlane.f32.xlu1 %v726_v44 }
 0x464   : > { %v728_v47 = vpop.xlane.xlu1 %727 }
 0x465   : > { %v729_v48 = vmul.f32 0.03125, %v728_v47 }
 0x467   : > { %v730_v49 = vadd.f32 1e-05, %v729_v48 }
 0x469   : > { %1069 = vrsqrt.f32 %v730_v49 }
 0x473   : > { %v1070_v52 = vpop.eup %1069 }
 0x474   : > { %v732_v54 = vmul.f32 %v1070_v52, %v724_v42 }
 0x476   : > { %v739_v56 = vmul.f32 %v961_v53, %v732_v54 }
 0x478   : > { %v746_v58 = vadd.f32 %v962_v55, %v739_v56 }
 0x47a   : > { %v834_v59 = vadd.f32 %v833_v57, %v746_v58 }
 0x47c   : > { %v835_v61 = vmax.f32 %v834_v59, 0.0 }
 0x47e   : > { %v843_v62 = vmul.f32 %v966_v60, %v835_v61 }
 0x480   : > { %v844_v63 = vsel %vm604_vm2, %v843_v62, 0.0 }
 0x481   : > { %845 = vadd.xlane.f32.xlu0 %v844_v63 }
 0x50e   : > { %v846_v1 = vpop.xlane.xlu0 %845 }
 0x50f   : > { %v854_v2 = vadd.f32 %v967_v0, %v846_v1 }
 0x511   : > { %856 = vst.msk [vmem:[%s516_s23] sm:$0xff] %vm855_vm5, %v854_v2 }
 0x512 PF: > { %s1485_s18 = sld [smem:[#allocation9_spill]]  ;;  %s1486_s15 = smov %s1159_s16 }
 0x513   : > { %s1487_s16 = smov %s1163_s17  ;;  %s1488_s17 = smov %s1324_s12 }
 0x518   : > { %p27_p8 = scmp.ge.s32.totalorder %s1485_s18, 4  }
 0x51a   :  { %29 = sbr.rel (!%p27_p8) target bundleno = 9 (0x9), region = 123 }
 0x521   :  { %876 = vsyncpa [#allocation4], 1 }
 0x522   :  { %878 = vsyncpa [#allocation4 + $0x1], 1 }
 0x523   :  { %879 = vsyncpa [#allocation6], 1 }

</bundles_post_ra>
